<compile_context>
chip_gen: v5e
topology: v5e:2x2
jax: 0.10.0
libtpu: 0.0.40
codegen_flags: <defaults>
</compile_context>

<pallas_src>
import functools

import jax
import jax.numpy as jnp
from jax.experimental import pallas as pl
from jax.experimental.pallas import tpu as pltpu


def _argmax_kernel(x_ref, ids_ref, m_sc, *, num_classes):
    """Online argmax over the class axis. Grid = (batch_tiles, class_tiles)."""
    k = pl.program_id(1)

    @pl.when(k == 0)
    def _():
        m_sc[...] = jnp.full_like(m_sc, -jnp.inf)
        ids_ref[...] = jnp.zeros_like(ids_ref)

    x = x_ref[...]                                           # [TB, TC], input dtype
    tb, tc = x.shape
    col = jax.lax.broadcasted_iota(jnp.int32, (tb, tc), 1)   # local (per-tile) iota

    if num_classes % tc != 0:
        # Mask the Pallas-padded lanes of the last class tile so they can never win.
        x = jnp.where(col < (num_classes - k * tc), x,
                      jnp.array(-jnp.inf, dtype=x.dtype))

    tile_max = jnp.max(x, axis=-1, keepdims=True)            # [TB, 1], input dtype
    # First occurrence of the tile max within this tile (always >= 1 match); add the
    # class-tile offset to the reduced [TB, 1] result, not to the full-size iota.
    tile_idx = jnp.min(
        jnp.where(x == tile_max, col, jnp.iinfo(jnp.int32).max),
        axis=-1, keepdims=True).astype(jnp.int32) + k * tc   # [TB, 1]

    tile_max = tile_max.astype(jnp.float32)                  # only [TB, 1] upcast
    # Strict '>' keeps the earliest class tile on ties -> global first occurrence.
    better = tile_max > m_sc[...]
    m_sc[...] = jnp.where(better, tile_max, m_sc[...])
    ids_ref[...] = jnp.where(better, tile_idx, ids_ref[...])


def _round_up(n, m):
    return ((n + m - 1) // m) * m


_TARGET_BLOCK_BYTES = 4 * 1024 * 1024  # ~4 MiB: double-buffered fits v5e's 16 MiB scoped VMEM


def _choose_tiles(B, C, itemsize, target_bytes=_TARGET_BLOCK_BYTES):
    """Couple (tb, tc) toward ~target_bytes per x block; sublane/lane aligned."""
    sub = 8 * max(1, 4 // itemsize)              # packed-sublane multiple (8 / 16 / 32)
    b_aligned = B if B < sub else _round_up(B, sub)
    if sub * C * itemsize <= target_bytes:
        # Whole class row per block; grow the batch tile toward the byte budget.
        tc = C
        rows = (target_bytes // (C * itemsize)) // sub * sub
        tb = int(min(b_aligned, max(sub, min(rows, 2048))))
    else:
        # Class axis must be tiled: minimal batch tile, lane-aligned class chunk sized
        # from the byte budget (the small-batch / large-vocab inference shape).
        tb = B if B < sub else sub
        tc = (target_bytes // (max(tb, sub) * itemsize)) // 128 * 128
        tc = int(min(max(tc, 512), (C // 128) * 128))
    # v7x megacore: guarantee >= 2 batch tiles when B allows it, so both TensorCores
    # get work on the "parallel" axis (a harmless extra grid step on 1-TC chips).
    while tb >= 2 * sub and -(-B // tb) < 2:
        tb = _round_up(tb // 2, sub)
    return int(tb), int(tc)


@functools.partial(jax.jit, static_argnames=("tb", "tc"))
def _argmax_last_dim(x, *, tb=None, tc=None):
    """argmax over the last dim of x[B, C] via the Pallas kernel; returns int32 [B]."""
    B, C = x.shape
    itemsize = x.dtype.itemsize
    tb_d, tc_d = _choose_tiles(B, C, itemsize)
    tb = tb_d if tb is None else tb
    tc = tc_d if tc is None else tc

    grid = (pl.cdiv(B, tb), pl.cdiv(C, tc))
    block_bytes = tb * tc * itemsize
    vmem_limit = int(min(48 << 20, max(16 << 20, 3 * block_bytes + (1 << 20))))

    ids = pl.pallas_call(
        functools.partial(_argmax_kernel, num_classes=C),
        out_shape=jax.ShapeDtypeStruct((B, 1), jnp.int32),
        grid=grid,
        in_specs=[pl.BlockSpec((tb, tc), lambda i, k: (i, k))],
        out_specs=pl.BlockSpec((tb, 1), lambda i, k: (i, 0)),
        scratch_shapes=[pltpu.VMEM((tb, 1), jnp.float32)],
        compiler_params=pltpu.CompilerParams(
            dimension_semantics=("parallel", "arbitrary"),
            vmem_limit_bytes=vmem_limit),
        cost_estimate=pl.CostEstimate(
            flops=6 * B * C, transcendentals=0,
            bytes_accessed=B * C * itemsize + B * 4),
    )(x)
    return ids[:, 0]


def classification_head(x, gps_table, *, tb=None, tc=None):
    """x: [B, C] logits (f32 or bf16); gps_table: [C, 2] (lat, lon) per class id."""
    ids = _argmax_last_dim(x, tb=tb, tc=tc)
    # id -> gps lookup: trivial [B] -> [B, 2] gather, done outside the kernel so the
    # hot path stays HBM-read bound (no one-hot / MXU waste).
    gps = jnp.take(gps_table, ids, axis=0)
    # Mirrors: return {'label': x, **self.id_to_gps(x.argmax(dim=-1))}
    return {"label": x, "gps": gps}, ids


if __name__ == "__main__":
    key = jax.random.PRNGKey(0)
    B, C = 8, 128                                  # batch, num_classes (small shapes)

    x = jax.random.normal(key, (B, C), dtype=jnp.float32)

    # Deterministic synthetic id->gps table (the "id_to_gps" module's parameters).
    class_ids = jnp.arange(C, dtype=jnp.float32)
    lat = -90.0 + 180.0 * class_ids / (C - 1)
    lon = -180.0 + 360.0 * ((class_ids * 7.0) % C) / (C - 1)
    gps_table = jnp.stack([lat, lon], axis=-1)     # [C, 2]

    out, ids = classification_head(x, gps_table)
    jax.block_until_ready(out)
    jax.block_until_ready(ids)

    ref_ids = jnp.argmax(x, axis=-1).astype(jnp.int32)
    assert jnp.array_equal(ids, ref_ids)
    assert jnp.allclose(out["gps"], gps_table[ref_ids])
    assert jnp.array_equal(out["label"], x)

    # Multi-tile path: batch remainder (20 % 8) and class remainder (300 % 128) handled
    # in-kernel (no jnp.pad), online (max, idx) carry across class tiles.
    B2, C2 = 20, 300
    x2 = jax.random.normal(jax.random.PRNGKey(1), (B2, C2), dtype=jnp.float32)
    t2 = jnp.stack([jnp.arange(C2, dtype=jnp.float32),
                    -jnp.arange(C2, dtype=jnp.float32)], axis=-1)
    out2, ids2 = classification_head(x2, t2, tb=8, tc=128)
    jax.block_until_ready(out2)
    ref_ids2 = jnp.argmax(x2, axis=-1).astype(jnp.int32)
    assert jnp.array_equal(ids2, ref_ids2)
    assert jnp.allclose(out2["gps"], t2[ref_ids2])

    # bf16 path: reduction stays in bf16 (no full-tile f32 cast); auto-chosen tiles
    # give two batch tiles (v7x megacore) with a full-row class tile.
    B3, C3 = 32, 200
    x3 = jax.random.normal(jax.random.PRNGKey(2), (B3, C3), dtype=jnp.bfloat16)
    t3 = jnp.stack([jnp.arange(C3, dtype=jnp.float32),
                    2.0 * jnp.arange(C3, dtype=jnp.float32)], axis=-1)
    out3, ids3 = classification_head(x3, t3)
    jax.block_until_ready(out3)
    ref_ids3 = jnp.argmax(x3, axis=-1).astype(jnp.int32)
    assert jnp.array_equal(ids3, ref_ids3)
    assert jnp.allclose(out3["gps"], t3[ref_ids3])

    print("KERNEL_OK")
</pallas_src>

<mosaic_0001>
module attributes {stable_mosaic.version = 11 : i64} {
  func.func @_argmax_kernel(%arg0: i32, %arg1: i32, %arg2: memref<8x128xf32, #tpu.memory_space<vmem>>, %arg3: memref<8x1xi32, #tpu.memory_space<vmem>>, %arg4: memref<8x1xf32, #tpu.memory_space<vmem>>) attributes {dimension_semantics = [#tpu.dimension_semantics<parallel>, #tpu.dimension_semantics<arbitrary>], iteration_bounds = array<i64: 1, 1>, scalar_prefetch = 0 : i64, scratch_operands = 1 : i64, tpu.core_type = #tpu.core_type<tc>, window_params = [{transform_indices = @transform_0, window_bounds = array<i64: 8, 128>}, {transform_indices = @transform_1, window_bounds = array<i64: 8, 1>}]} {
    %c0_i32 = arith.constant 0 : i32
    %0 = arith.cmpi eq, %arg1, %c0_i32 : i32
    %1 = arith.extui %0 : i1 to i32
    %c0_i32_0 = arith.constant 0 : i32
    %2 = arith.cmpi ne, %1, %c0_i32_0 : i32
    scf.if %2 {
      %cst_13 = arith.constant 0xFF800000 : f32
      %24 = vector.broadcast %cst_13 : f32 to vector<8x1xf32>
      %c0_14 = arith.constant 0 : index
      %c0_15 = arith.constant 0 : index
      %25 = vector.load %arg4[%c0_14, %c0_15] : memref<8x1xf32, #tpu.memory_space<vmem>>, vector<8x1xf32>
      tpu.vector_store %arg4[%c0_14, %c0_15], %24 {strides = array<i32>} : memref<8x1xf32, #tpu.memory_space<vmem>>, vector<8x1xf32>,
      %c0_i32_16 = arith.constant 0 : i32
      %26 = vector.broadcast %c0_i32_16 : i32 to vector<8x1xi32>
      %c0_17 = arith.constant 0 : index
      %c0_18 = arith.constant 0 : index
      %27 = vector.load %arg3[%c0_17, %c0_18] : memref<8x1xi32, #tpu.memory_space<vmem>>, vector<8x1xi32>
      tpu.vector_store %arg3[%c0_17, %c0_18], %26 {strides = array<i32>} : memref<8x1xi32, #tpu.memory_space<vmem>>, vector<8x1xi32>,
    } else {
    }
    %c0 = arith.constant 0 : index
    %c0_1 = arith.constant 0 : index
    %3 = vector.load %arg2[%c0, %c0_1] : memref<8x128xf32, #tpu.memory_space<vmem>>, vector<8x128xf32>
    %4 = tpu.iota {dimensions = array<i32: 1>} : vector<8x128xi32>
    %cst = arith.constant dense<0xFF800000> : vector<8xf32>
    %5 = vector.multi_reduction <maximumf>, %3, %cst [1] : vector<8x128xf32> to vector<8xf32>
    %6 = vector.shape_cast %5 : vector<8xf32> to vector<8x1xf32>
    %7 = vector.broadcast %6 : vector<8x1xf32> to vector<8x128xf32>
    %8 = arith.cmpf oeq, %3, %7 : vector<8x128xf32>
    %c2147483647_i32 = arith.constant 2147483647 : i32
    %9 = vector.broadcast %c2147483647_i32 : i32 to vector<8x128xi32>
    %10 = arith.select %8, %4, %9 : vector<8x128xi1>, vector<8x128xi32>
    %cst_2 = arith.constant dense<2147483647> : vector<8xi32>
    %11 = vector.multi_reduction <minsi>, %10, %cst_2 [1] : vector<8x128xi32> to vector<8xi32>
    %12 = vector.shape_cast %11 : vector<8xi32> to vector<8x1xi32>
    %c128_i32 = arith.constant 128 : i32
    %13 = arith.muli %arg1, %c128_i32 : i32
    %14 = vector.broadcast %13 : i32 to vector<8x1xi32>
    %15 = arith.addi %12, %14 : vector<8x1xi32>
    %c0_3 = arith.constant 0 : index
    %c0_4 = arith.constant 0 : index
    %16 = vector.load %arg4[%c0_3, %c0_4] : memref<8x1xf32, #tpu.memory_space<vmem>>, vector<8x1xf32>
    %17 = arith.cmpf ogt, %6, %16 : vector<8x1xf32>
    %c0_5 = arith.constant 0 : index
    %c0_6 = arith.constant 0 : index
    %18 = vector.load %arg4[%c0_5, %c0_6] : memref<8x1xf32, #tpu.memory_space<vmem>>, vector<8x1xf32>
    %19 = arith.select %17, %6, %18 : vector<8x1xi1>, vector<8x1xf32>
    %c0_7 = arith.constant 0 : index
    %c0_8 = arith.constant 0 : index
    %20 = vector.load %arg4[%c0_7, %c0_8] : memref<8x1xf32, #tpu.memory_space<vmem>>, vector<8x1xf32>
    tpu.vector_store %arg4[%c0_7, %c0_8], %19 {strides = array<i32>} : memref<8x1xf32, #tpu.memory_space<vmem>>, vector<8x1xf32>,
    %c0_9 = arith.constant 0 : index
    %c0_10 = arith.constant 0 : index
    %21 = vector.load %arg3[%c0_9, %c0_10] : memref<8x1xi32, #tpu.memory_space<vmem>>, vector<8x1xi32>
    %22 = arith.select %17, %15, %21 : vector<8x1xi1>, vector<8x1xi32>
    %c0_11 = arith.constant 0 : index
    %c0_12 = arith.constant 0 : index
    %23 = vector.load %arg3[%c0_11, %c0_12] : memref<8x1xi32, #tpu.memory_space<vmem>>, vector<8x1xi32>
    tpu.vector_store %arg3[%c0_11, %c0_12], %22 {strides = array<i32>} : memref<8x1xi32, #tpu.memory_space<vmem>>, vector<8x1xi32>,
    return
  }
  func.func @transform_0(%arg0: i32, %arg1: i32) -> (i32, i32) {
    %c0_i32 = arith.constant 0 : i32
    return %arg0, %arg1 : i32, i32
  }
  func.func @transform_1(%arg0: i32, %arg1: i32) -> (i32, i32) {
    %c0_i32 = arith.constant 0 : i32
    %c0_i32_0 = arith.constant 0 : i32
    return %arg0, %c0_i32 : i32, i32
  }
}

</mosaic_0001>

<bundles_post_ra>
// kernel: _argmax_last_dim.1
= control target key start
LH: loop header
LB: loop body
LE: loop exit
PB: predicated region body
PF: predicated region fallthrough
CT: control target
= control target key end

     0   :  { %6 = vsyncpa [#allocation4], 0  ;;  %s95_s9 = smov [#allocation3]   ;;  %s126_s0 = inlined_call_operand.hbm [shape: f32[8,128], index: 0, kind: input, shape index: {}]   ;;  %s127_s1 = inlined_call_operand.vmem [shape: s32[8,1], index: 1, kind: output, shape index: {}]  }
   0x1   :  { %s12_s8 = sshll.u32 %s126_s0, 4  ;;  %s14_s10 = sshll.u32 %s95_s9, 4  ;;  %s13_s8 = int_to_ptr.hbm [resolvable:$true] %s12_s8  ;;  %s15_s10 = int_to_ptr.vmem [resolvable:$true] %s14_s10 }
   0x2   :  { %17 = dma.hbm_to_vmem [thread:$0]  %s13_s8, 128, %s15_s10, [#allocation4]  }
   0x3   :  { %93 = dma.done.wait [#allocation4], 128  }
   0x4   :  { %94 = vsyncadd [#allocation4], 4294967168  ;;  %vm26_vm0 = vcmask 7168   ;;  %v96_v0 = vmov -inf   ;;  %v97_v1 = vmov 0   ;;  %v29_v2 = vld [vmem:[#allocation3] sm:$0xff]  ;;  %v30_v3 = vlaneseq }
   0x5   :  { %27 = vst.msk [vmem:[#allocation2] sm:$0xff] %vm26_vm0, %v96_v0  ;;  %32 = vmax.xlane.f32.xlu0 %v29_v2 }
   0x6   :  { %28 = vst.msk [vmem:[%s127_s1] sm:$0xff] %vm26_vm0, %v97_v1  ;;  %v31_v5 = vand.u32 127, %v30_v3 }
   0xc   :  { %v53_v4 = vld [vmem:[#allocation2] sm:$0xff] }
   0xd   :  { %v58_v19 = vld [vmem:[%s127_s1] sm:$0xff] }
  0x78   :  { %v33_v6 = vpop.xlane.xlu0 %32 }
  0x79   :  { %vm34_vm1 = vcmp.eq.f32.partialorder %v29_v2, %v33_v6  ;;  %vm54_vm2 = vcmp.gt.f32.partialorder %v33_v6, %v53_v4 }
  0x7a   :  { %v55_v7 = vsel %vm54_vm2, %v33_v6, %v53_v4  ;;  %v35_v8 = vsel %vm34_vm1, %v31_v5, 2147483647 }
  0x7b   :  { %57 = vst.msk [vmem:[#allocation2] sm:$0xff] %vm26_vm0, %v55_v7  ;;  %v37_v9 = vshra.s32 %v35_v8, 16  ;;  %v36_v11 = vand.u32 65535, %v35_v8 }
  0x7d   :  { %v39_v10 = vcvt.s32.f32 %v37_v9  ;;  %v38_v13 = vcvt.s32.f32 %v36_v11 }
  0x7f   :  { %40 = vmin.xlane.f32.xlu0 %v39_v10 }
  0xf2   :  { %v41_v12 = vpop.xlane.xlu0 %40 }
  0xf3   :  { %vm42_vm3 = vcmp.eq.f32.partialorder %v39_v10, %v41_v12  ;;  %v47_v15 = vcvt.f32.s32 %v41_v12 }
  0xf4   :  { %v43_v14 = vsel %vm42_vm3, %v38_v13, inf }
  0xf5   :  { %44 = vmin.xlane.f32.xlu1 %v43_v14  ;;  %v48_v17 = vshll.u32 %v47_v15, 16 }
 0x168   :  { %v45_v16 = vpop.xlane.xlu1 %44 }
 0x169   :  { %v46_v18 = vcvt.f32.s32 %v45_v16 }
 0x16b   :  { %v49_v20 = vadd.s32 %v48_v17, %v46_v18 }
 0x16d   :  { %v59_v21 = vsel %vm54_vm2, %v49_v20, %v58_v19 }
 0x16e   :  { %60 = vst.msk [vmem:[%s127_s1] sm:$0xff] %vm26_vm0, %v59_v21 }
 0x16f   :  { %65 = vsyncpa [#allocation4], 1 }

</bundles_post_ra>
